<compile_context>
chip_gen: v7x
topology: tpu7x:2x2x1
jax: 0.10.0
libtpu: 0.0.40
codegen_flags: <defaults>
</compile_context>

<pallas_src>
import math
from functools import partial

import jax
import jax.numpy as jnp
from jax.experimental import pallas as pl
from jax.experimental.pallas import tpu as pltpu

# ---- model hyperparameters (small, consistent with the module) ----
B = 2          # batch
S = 8          # sequence length
D_MODEL = 32   # d_model == d_input (residual forces d_input == d_model)
NUM_HEADS = 4
DEPTH = D_MODEL // NUM_HEADS
DFF = 64
EPS = 1e-6


def encoder_layer_kernel(
    x_ref,        # (B*S, D)
    wbig_ref,     # (D, H*D + 2D + DFF) = [Wvo | Wq*scale | Wk | W1]
    w2_ref,       # (DFF, D)
    const_ref,    # (8, max(D, DFF)) rows: [bo, b2, ln1_g, ln1_b, ln2_g, ln2_b, b1, pad]
    out_ref,      # (B*S, D)
    *,
    batch,
    seq,
    num_heads,
):
    d_model = x_ref.shape[-1]
    dff = w2_ref.shape[0]
    depth = d_model // num_heads
    hd = num_heads * d_model          # width of the fused Wvo block

    x = x_ref[...]                    # (B*S, D)
    wbig = wbig_ref[...]              # (D, hd + 2D + DFF)
    consts = const_ref[...]           # (8, max(D, DFF))

    bo = consts[0:1, 0:d_model]
    b2 = consts[1:2, 0:d_model]
    ln1_g = consts[2:3, 0:d_model]
    ln1_b = consts[3:4, 0:d_model]
    ln2_g = consts[4:5, 0:d_model]
    ln2_b = consts[5:6, 0:d_model]
    b1 = consts[6:7, 0:dff]

    # ---- one wide MXU pass for all x-projections (Wvo / Wq / Wk; the trailing
    #      W1 columns are computed too but discarded — MXU is ~0% utilised here) ----
    proj = jnp.dot(x, wbig, preferred_element_type=jnp.float32)   # (B*S, hd+2D+DFF)
    vo = proj[:, 0:hd]                                            # (B*S, H*D)
    q = proj[:, hd:hd + d_model]                                  # scale already folded in
    k = proj[:, hd + d_model:hd + 2 * d_model]

    # ---- attention: fully unrolled per-(batch, head), accumulate into the
    #      already-Wo-projected space (Wvo fusion) ----
    att_rows = []
    for b in range(batch):
        r0 = b * seq
        vo_b = vo[r0:r0 + seq, :]                                 # (S, H*D)
        acc_b = None
        for h in range(num_heads):
            c0 = h * depth
            q_bh = q[r0:r0 + seq, c0:c0 + depth]                  # (S, depth)
            k_bh = k[r0:r0 + seq, c0:c0 + depth]                  # (S, depth)
            lg = jax.lax.dot_general(
                q_bh, k_bh, (((1,), (1,)), ((), ())),
                preferred_element_type=jnp.float32)               # (S, S)
            lg = lg - jnp.max(lg, axis=-1, keepdims=True)
            e = jnp.exp(lg)
            p = e / jnp.sum(e, axis=-1, keepdims=True)            # exact softmax
            pv = jnp.dot(p, vo_b[:, h * d_model:(h + 1) * d_model],
                         preferred_element_type=jnp.float32)      # (S, D)
            acc_b = pv if acc_b is None else acc_b + pv
        att_rows.append(acc_b)
    att_out = jnp.concatenate(att_rows, axis=0) + bo              # (B*S, D)

    # dropout1 == identity (eval)
    res1 = x + att_out

    # ---- LayerNorm 1 ----
    mu1 = jnp.mean(res1, axis=-1, keepdims=True)
    var1 = jnp.mean((res1 - mu1) ** 2, axis=-1, keepdims=True)
    out1 = (res1 - mu1) * jax.lax.rsqrt(var1 + EPS) * ln1_g + ln1_b

    # ---- FFN: relu(layer2(layer1(out1)))  (ReLU only after layer2, per source) ----
    w1 = wbig[:, hd + 2 * d_model:]                               # (D, DFF)
    hid = jnp.dot(out1, w1, preferred_element_type=jnp.float32) + b1
    ffn = jnp.maximum(
        jnp.dot(hid, w2_ref[...], preferred_element_type=jnp.float32) + b2, 0.0)

    # dropout2 == identity (eval)
    res2 = out1 + ffn

    # ---- LayerNorm 2 ----
    mu2 = jnp.mean(res2, axis=-1, keepdims=True)
    var2 = jnp.mean((res2 - mu2) ** 2, axis=-1, keepdims=True)
    out = (res2 - mu2) * jax.lax.rsqrt(var2 + EPS) * ln2_g + ln2_b

    out_ref[...] = out.astype(out_ref.dtype)


def pack_params(params):
    """One-time packing of weights/vectors into kernel-friendly slabs."""
    (wq, wk, wv, wo, bo, ln1_g, ln1_b, w1, b1, w2, b2, ln2_g, ln2_b) = params
    d_model = wq.shape[0]
    depth = d_model // NUM_HEADS
    dff = w1.shape[1]
    scale = 1.0 / math.sqrt(depth)

    # fold 1/sqrt(depth) into Wq; algebraically fuse Wv·Wo per head
    wq_s = wq * scale
    wvo = jnp.concatenate(
        [wv[:, h * depth:(h + 1) * depth] @ wo[h * depth:(h + 1) * depth, :]
         for h in range(NUM_HEADS)],
        axis=1)                                                    # (D, H*D)

    # big weight slab: [Wvo | Wq*scale | Wk | W1]  (Wvo lane-tile aligned at 0)
    wbig = jnp.concatenate([wvo, wq_s, wk, w1], axis=1)            # (D, H*D + 2D + DFF)

    # constants slab (8, max(D, DFF)): rows 0-5 are the D-sized vectors, row 6 = b1
    width = max(d_model, dff)

    def pad(v):
        return jnp.pad(v, ((0, 0), (0, width - v.shape[1])))

    consts = jnp.concatenate(
        [pad(bo), pad(b2), pad(ln1_g), pad(ln1_b), pad(ln2_g), pad(ln2_b),
         pad(b1), jnp.zeros((1, width), jnp.float32)],
        axis=0)                                                    # (8, width)

    return wbig, w2, consts


def encoder_layer(x, packed):
    """Single-invocation (no grid) pallas_call on the flattened (B*S, D) slab."""
    wbig, w2, consts = packed
    Bx, Sx, Dx = x.shape
    x_flat = x.reshape(Bx * Sx, Dx)

    vmem = pltpu.MemorySpace.VMEM
    kernel = partial(encoder_layer_kernel, batch=Bx, seq=Sx, num_heads=NUM_HEADS)

    out_flat = pl.pallas_call(
        kernel,
        out_shape=jax.ShapeDtypeStruct((Bx * Sx, Dx), x.dtype),
        in_specs=[pl.BlockSpec(memory_space=vmem)] * 4,
        out_specs=pl.BlockSpec(memory_space=vmem),
    )(x_flat, wbig, w2, consts)

    return out_flat.reshape(Bx, Sx, Dx)


def encoder_layer_ref(x, params):
    """Pure-JAX reference mirroring the PyTorch forward (working path)."""
    (wq, wk, wv, wo, bo, ln1_g, ln1_b, w1, b1, w2, b2, ln2_g, ln2_b) = params
    Bx, Sx, Dx = x.shape
    q = (x @ wq).reshape(Bx, Sx, NUM_HEADS, DEPTH).transpose(0, 2, 1, 3)
    k = (x @ wk).reshape(Bx, Sx, NUM_HEADS, DEPTH).transpose(0, 2, 1, 3)
    v = (x @ wv).reshape(Bx, Sx, NUM_HEADS, DEPTH).transpose(0, 2, 1, 3)
    logits = jnp.einsum("bhqd,bhkd->bhqk", q, k) / math.sqrt(DEPTH)
    p = jax.nn.softmax(logits, axis=-1)
    att = jnp.einsum("bhqk,bhkd->bhqd", p, v).transpose(0, 2, 1, 3).reshape(Bx, Sx, Dx)
    att = att @ wo + bo
    res1 = x + att
    mu1 = res1.mean(-1, keepdims=True)
    var1 = ((res1 - mu1) ** 2).mean(-1, keepdims=True)
    out1 = (res1 - mu1) / jnp.sqrt(var1 + EPS) * ln1_g + ln1_b
    ffn = jnp.maximum((out1 @ w1 + b1) @ w2 + b2, 0.0)
    res2 = out1 + ffn
    mu2 = res2.mean(-1, keepdims=True)
    var2 = ((res2 - mu2) ** 2).mean(-1, keepdims=True)
    return (res2 - mu2) / jnp.sqrt(var2 + EPS) * ln2_g + ln2_b


def init_params(key):
    ks = jax.random.split(key, 8)
    scale = 0.05
    wq = scale * jax.random.normal(ks[0], (D_MODEL, D_MODEL), jnp.float32)
    wk = scale * jax.random.normal(ks[1], (D_MODEL, D_MODEL), jnp.float32)
    wv = scale * jax.random.normal(ks[2], (D_MODEL, D_MODEL), jnp.float32)
    wo = scale * jax.random.normal(ks[3], (D_MODEL, D_MODEL), jnp.float32)
    bo = 0.01 * jax.random.normal(ks[4], (1, D_MODEL), jnp.float32)
    ln1_g = jnp.ones((1, D_MODEL), jnp.float32)
    ln1_b = jnp.zeros((1, D_MODEL), jnp.float32)
    w1 = scale * jax.random.normal(ks[5], (D_MODEL, DFF), jnp.float32)
    b1 = 0.01 * jax.random.normal(ks[6], (1, DFF), jnp.float32)
    w2 = scale * jax.random.normal(ks[7], (DFF, D_MODEL), jnp.float32)
    b2 = jnp.zeros((1, D_MODEL), jnp.float32)
    ln2_g = jnp.ones((1, D_MODEL), jnp.float32)
    ln2_b = jnp.zeros((1, D_MODEL), jnp.float32)
    return (wq, wk, wv, wo, bo, ln1_g, ln1_b, w1, b1, w2, b2, ln2_g, ln2_b)


if __name__ == "__main__":
    key = jax.random.PRNGKey(0)
    kx, kp = jax.random.split(key)
    x = jax.random.normal(kx, (B, S, D_MODEL), jnp.float32)
    params = init_params(kp)

    # pack once (not per forward call)
    packed = jax.block_until_ready(pack_params(params))

    out = encoder_layer(x, packed)
    out = jax.block_until_ready(out)

    ref = encoder_layer_ref(x, params)
    assert out.shape == (B, S, D_MODEL)
    assert jnp.allclose(out, ref, rtol=1e-2, atol=1e-2), "mismatch vs JAX reference"

    print("KERNEL_OK")
</pallas_src>

<mosaic_0001>
module attributes {stable_mosaic.version = 11 : i64} {
  func.func @encoder_layer_kernel(%arg0: memref<16x32xf32, #tpu.memory_space<vmem>>, %arg1: memref<32x256xf32, #tpu.memory_space<vmem>>, %arg2: memref<64x32xf32, #tpu.memory_space<vmem>>, %arg3: memref<8x64xf32, #tpu.memory_space<vmem>>, %arg4: memref<16x32xf32, #tpu.memory_space<vmem>>) attributes {dimension_semantics = [], scalar_prefetch = 0 : i64, scratch_operands = 0 : i64, tpu.core_type = #tpu.core_type<tc>} {
    %c0 = arith.constant 0 : index
    %c0_0 = arith.constant 0 : index
    %0 = vector.load %arg0[%c0, %c0_0] : memref<16x32xf32, #tpu.memory_space<vmem>>, vector<16x32xf32>
    %c0_1 = arith.constant 0 : index
    %c0_2 = arith.constant 0 : index
    %1 = vector.load %arg1[%c0_1, %c0_2] : memref<32x256xf32, #tpu.memory_space<vmem>>, vector<32x256xf32>
    %c0_3 = arith.constant 0 : index
    %c0_4 = arith.constant 0 : index
    %2 = vector.load %arg3[%c0_3, %c0_4] : memref<8x64xf32, #tpu.memory_space<vmem>>, vector<8x64xf32>
    %3 = vector.extract_strided_slice %2 {offsets = [0, 0], sizes = [1, 32], strides = [1, 1]} : vector<8x64xf32> to vector<1x32xf32>
    %4 = vector.extract_strided_slice %2 {offsets = [1, 0], sizes = [1, 32], strides = [1, 1]} : vector<8x64xf32> to vector<1x32xf32>
    %5 = vector.extract_strided_slice %2 {offsets = [2, 0], sizes = [1, 32], strides = [1, 1]} : vector<8x64xf32> to vector<1x32xf32>
    %6 = vector.extract_strided_slice %2 {offsets = [3, 0], sizes = [1, 32], strides = [1, 1]} : vector<8x64xf32> to vector<1x32xf32>
    %7 = vector.extract_strided_slice %2 {offsets = [4, 0], sizes = [1, 32], strides = [1, 1]} : vector<8x64xf32> to vector<1x32xf32>
    %8 = vector.extract_strided_slice %2 {offsets = [5, 0], sizes = [1, 32], strides = [1, 1]} : vector<8x64xf32> to vector<1x32xf32>
    %9 = vector.extract_strided_slice %2 {offsets = [6, 0], sizes = [1, 64], strides = [1, 1]} : vector<8x64xf32> to vector<1x64xf32>
    %cst = arith.constant dense<0.000000e+00> : vector<16x256xf32>
    %10 = tpu.matmul %0, %1, %cst {dimension_numbers = #tpu.dot_dimension_numbers<[1], [0], [0], [1], [0, 0, 1, 1], [], []>} : vector<16x32xf32>, vector<32x256xf32>, vector<16x256xf32> -> vector<16x256xf32>
    %11 = vector.extract_strided_slice %10 {offsets = [0, 0], sizes = [16, 128], strides = [1, 1]} : vector<16x256xf32> to vector<16x128xf32>
    %12 = vector.extract_strided_slice %10 {offsets = [0, 128], sizes = [16, 32], strides = [1, 1]} : vector<16x256xf32> to vector<16x32xf32>
    %13 = vector.extract_strided_slice %10 {offsets = [0, 160], sizes = [16, 32], strides = [1, 1]} : vector<16x256xf32> to vector<16x32xf32>
    %14 = vector.extract_strided_slice %11 {offsets = [0, 0], sizes = [8, 128], strides = [1, 1]} : vector<16x128xf32> to vector<8x128xf32>
    %15 = vector.extract_strided_slice %12 {offsets = [0, 0], sizes = [8, 8], strides = [1, 1]} : vector<16x32xf32> to vector<8x8xf32>
    %16 = vector.extract_strided_slice %13 {offsets = [0, 0], sizes = [8, 8], strides = [1, 1]} : vector<16x32xf32> to vector<8x8xf32>
    %cst_5 = arith.constant dense<0.000000e+00> : vector<8x8xf32>
    %17 = tpu.matmul %15, %16, %cst_5 {dimension_numbers = #tpu.dot_dimension_numbers<[1], [1], [0], [0], [0, 0, 1, 0], [], []>} : vector<8x8xf32>, vector<8x8xf32>, vector<8x8xf32> -> vector<8x8xf32>
    %cst_6 = arith.constant dense<0xFF800000> : vector<8xf32>
    %18 = vector.multi_reduction <maximumf>, %17, %cst_6 [1] : vector<8x8xf32> to vector<8xf32>
    %19 = vector.shape_cast %18 : vector<8xf32> to vector<8x1xf32>
    %20 = vector.broadcast %19 : vector<8x1xf32> to vector<8x8xf32>
    %21 = arith.subf %17, %20 : vector<8x8xf32>
    %22 = math.exp %21 : vector<8x8xf32>
    %cst_7 = arith.constant dense<0.000000e+00> : vector<8xf32>
    %23 = vector.multi_reduction <add>, %22, %cst_7 [1] : vector<8x8xf32> to vector<8xf32>
    %24 = vector.shape_cast %23 : vector<8xf32> to vector<8x1xf32>
    %25 = vector.broadcast %24 : vector<8x1xf32> to vector<8x8xf32>
    %26 = arith.divf %22, %25 : vector<8x8xf32>
    %27 = vector.extract_strided_slice %14 {offsets = [0, 0], sizes = [8, 32], strides = [1, 1]} : vector<8x128xf32> to vector<8x32xf32>
    %cst_8 = arith.constant dense<0.000000e+00> : vector<8x32xf32>
    %28 = tpu.matmul %26, %27, %cst_8 {dimension_numbers = #tpu.dot_dimension_numbers<[1], [0], [0], [1], [0, 0, 1, 1], [], []>} : vector<8x8xf32>, vector<8x32xf32>, vector<8x32xf32> -> vector<8x32xf32>
    %29 = vector.extract_strided_slice %12 {offsets = [0, 8], sizes = [8, 8], strides = [1, 1]} : vector<16x32xf32> to vector<8x8xf32>
    %30 = vector.extract_strided_slice %13 {offsets = [0, 8], sizes = [8, 8], strides = [1, 1]} : vector<16x32xf32> to vector<8x8xf32>
    %cst_9 = arith.constant dense<0.000000e+00> : vector<8x8xf32>
    %31 = tpu.matmul %29, %30, %cst_9 {dimension_numbers = #tpu.dot_dimension_numbers<[1], [1], [0], [0], [0, 0, 1, 0], [], []>} : vector<8x8xf32>, vector<8x8xf32>, vector<8x8xf32> -> vector<8x8xf32>
    %cst_10 = arith.constant dense<0xFF800000> : vector<8xf32>
    %32 = vector.multi_reduction <maximumf>, %31, %cst_10 [1] : vector<8x8xf32> to vector<8xf32>
    %33 = vector.shape_cast %32 : vector<8xf32> to vector<8x1xf32>
    %34 = vector.broadcast %33 : vector<8x1xf32> to vector<8x8xf32>
    %35 = arith.subf %31, %34 : vector<8x8xf32>
    %36 = math.exp %35 : vector<8x8xf32>
    %cst_11 = arith.constant dense<0.000000e+00> : vector<8xf32>
    %37 = vector.multi_reduction <add>, %36, %cst_11 [1] : vector<8x8xf32> to vector<8xf32>
    %38 = vector.shape_cast %37 : vector<8xf32> to vector<8x1xf32>
    %39 = vector.broadcast %38 : vector<8x1xf32> to vector<8x8xf32>
    %40 = arith.divf %36, %39 : vector<8x8xf32>
    %41 = vector.extract_strided_slice %14 {offsets = [0, 32], sizes = [8, 32], strides = [1, 1]} : vector<8x128xf32> to vector<8x32xf32>
    %cst_12 = arith.constant dense<0.000000e+00> : vector<8x32xf32>
    %42 = tpu.matmul %40, %41, %cst_12 {dimension_numbers = #tpu.dot_dimension_numbers<[1], [0], [0], [1], [0, 0, 1, 1], [], []>} : vector<8x8xf32>, vector<8x32xf32>, vector<8x32xf32> -> vector<8x32xf32>
    %43 = arith.addf %28, %42 : vector<8x32xf32>
    %44 = vector.extract_strided_slice %12 {offsets = [0, 16], sizes = [8, 8], strides = [1, 1]} : vector<16x32xf32> to vector<8x8xf32>
    %45 = vector.extract_strided_slice %13 {offsets = [0, 16], sizes = [8, 8], strides = [1, 1]} : vector<16x32xf32> to vector<8x8xf32>
    %cst_13 = arith.constant dense<0.000000e+00> : vector<8x8xf32>
    %46 = tpu.matmul %44, %45, %cst_13 {dimension_numbers = #tpu.dot_dimension_numbers<[1], [1], [0], [0], [0, 0, 1, 0], [], []>} : vector<8x8xf32>, vector<8x8xf32>, vector<8x8xf32> -> vector<8x8xf32>
    %cst_14 = arith.constant dense<0xFF800000> : vector<8xf32>
    %47 = vector.multi_reduction <maximumf>, %46, %cst_14 [1] : vector<8x8xf32> to vector<8xf32>
    %48 = vector.shape_cast %47 : vector<8xf32> to vector<8x1xf32>
    %49 = vector.broadcast %48 : vector<8x1xf32> to vector<8x8xf32>
    %50 = arith.subf %46, %49 : vector<8x8xf32>
    %51 = math.exp %50 : vector<8x8xf32>
    %cst_15 = arith.constant dense<0.000000e+00> : vector<8xf32>
    %52 = vector.multi_reduction <add>, %51, %cst_15 [1] : vector<8x8xf32> to vector<8xf32>
    %53 = vector.shape_cast %52 : vector<8xf32> to vector<8x1xf32>
    %54 = vector.broadcast %53 : vector<8x1xf32> to vector<8x8xf32>
    %55 = arith.divf %51, %54 : vector<8x8xf32>
    %56 = vector.extract_strided_slice %14 {offsets = [0, 64], sizes = [8, 32], strides = [1, 1]} : vector<8x128xf32> to vector<8x32xf32>
    %cst_16 = arith.constant dense<0.000000e+00> : vector<8x32xf32>
    %57 = tpu.matmul %55, %56, %cst_16 {dimension_numbers = #tpu.dot_dimension_numbers<[1], [0], [0], [1], [0, 0, 1, 1], [], []>} : vector<8x8xf32>, vector<8x32xf32>, vector<8x32xf32> -> vector<8x32xf32>
    %58 = arith.addf %43, %57 : vector<8x32xf32>
    %59 = vector.extract_strided_slice %12 {offsets = [0, 24], sizes = [8, 8], strides = [1, 1]} : vector<16x32xf32> to vector<8x8xf32>
    %60 = vector.extract_strided_slice %13 {offsets = [0, 24], sizes = [8, 8], strides = [1, 1]} : vector<16x32xf32> to vector<8x8xf32>
    %cst_17 = arith.constant dense<0.000000e+00> : vector<8x8xf32>
    %61 = tpu.matmul %59, %60, %cst_17 {dimension_numbers = #tpu.dot_dimension_numbers<[1], [1], [0], [0], [0, 0, 1, 0], [], []>} : vector<8x8xf32>, vector<8x8xf32>, vector<8x8xf32> -> vector<8x8xf32>
    %cst_18 = arith.constant dense<0xFF800000> : vector<8xf32>
    %62 = vector.multi_reduction <maximumf>, %61, %cst_18 [1] : vector<8x8xf32> to vector<8xf32>
    %63 = vector.shape_cast %62 : vector<8xf32> to vector<8x1xf32>
    %64 = vector.broadcast %63 : vector<8x1xf32> to vector<8x8xf32>
    %65 = arith.subf %61, %64 : vector<8x8xf32>
    %66 = math.exp %65 : vector<8x8xf32>
    %cst_19 = arith.constant dense<0.000000e+00> : vector<8xf32>
    %67 = vector.multi_reduction <add>, %66, %cst_19 [1] : vector<8x8xf32> to vector<8xf32>
    %68 = vector.shape_cast %67 : vector<8xf32> to vector<8x1xf32>
    %69 = vector.broadcast %68 : vector<8x1xf32> to vector<8x8xf32>
    %70 = arith.divf %66, %69 : vector<8x8xf32>
    %71 = vector.extract_strided_slice %14 {offsets = [0, 96], sizes = [8, 32], strides = [1, 1]} : vector<8x128xf32> to vector<8x32xf32>
    %cst_20 = arith.constant dense<0.000000e+00> : vector<8x32xf32>
    %72 = tpu.matmul %70, %71, %cst_20 {dimension_numbers = #tpu.dot_dimension_numbers<[1], [0], [0], [1], [0, 0, 1, 1], [], []>} : vector<8x8xf32>, vector<8x32xf32>, vector<8x32xf32> -> vector<8x32xf32>
    %73 = arith.addf %58, %72 : vector<8x32xf32>
    %74 = vector.extract_strided_slice %11 {offsets = [8, 0], sizes = [8, 128], strides = [1, 1]} : vector<16x128xf32> to vector<8x128xf32>
    %75 = vector.extract_strided_slice %12 {offsets = [8, 0], sizes = [8, 8], strides = [1, 1]} : vector<16x32xf32> to vector<8x8xf32>
    %76 = vector.extract_strided_slice %13 {offsets = [8, 0], sizes = [8, 8], strides = [1, 1]} : vector<16x32xf32> to vector<8x8xf32>
    %cst_21 = arith.constant dense<0.000000e+00> : vector<8x8xf32>
    %77 = tpu.matmul %75, %76, %cst_21 {dimension_numbers = #tpu.dot_dimension_numbers<[1], [1], [0], [0], [0, 0, 1, 0], [], []>} : vector<8x8xf32>, vector<8x8xf32>, vector<8x8xf32> -> vector<8x8xf32>
    %cst_22 = arith.constant dense<0xFF800000> : vector<8xf32>
    %78 = vector.multi_reduction <maximumf>, %77, %cst_22 [1] : vector<8x8xf32> to vector<8xf32>
    %79 = vector.shape_cast %78 : vector<8xf32> to vector<8x1xf32>
    %80 = vector.broadcast %79 : vector<8x1xf32> to vector<8x8xf32>
    %81 = arith.subf %77, %80 : vector<8x8xf32>
    %82 = math.exp %81 : vector<8x8xf32>
    %cst_23 = arith.constant dense<0.000000e+00> : vector<8xf32>
    %83 = vector.multi_reduction <add>, %82, %cst_23 [1] : vector<8x8xf32> to vector<8xf32>
    %84 = vector.shape_cast %83 : vector<8xf32> to vector<8x1xf32>
    %85 = vector.broadcast %84 : vector<8x1xf32> to vector<8x8xf32>
    %86 = arith.divf %82, %85 : vector<8x8xf32>
    %87 = vector.extract_strided_slice %74 {offsets = [0, 0], sizes = [8, 32], strides = [1, 1]} : vector<8x128xf32> to vector<8x32xf32>
    %cst_24 = arith.constant dense<0.000000e+00> : vector<8x32xf32>
    %88 = tpu.matmul %86, %87, %cst_24 {dimension_numbers = #tpu.dot_dimension_numbers<[1], [0], [0], [1], [0, 0, 1, 1], [], []>} : vector<8x8xf32>, vector<8x32xf32>, vector<8x32xf32> -> vector<8x32xf32>
    %89 = vector.extract_strided_slice %12 {offsets = [8, 8], sizes = [8, 8], strides = [1, 1]} : vector<16x32xf32> to vector<8x8xf32>
    %90 = vector.extract_strided_slice %13 {offsets = [8, 8], sizes = [8, 8], strides = [1, 1]} : vector<16x32xf32> to vector<8x8xf32>
    %cst_25 = arith.constant dense<0.000000e+00> : vector<8x8xf32>
    %91 = tpu.matmul %89, %90, %cst_25 {dimension_numbers = #tpu.dot_dimension_numbers<[1], [1], [0], [0], [0, 0, 1, 0], [], []>} : vector<8x8xf32>, vector<8x8xf32>, vector<8x8xf32> -> vector<8x8xf32>
    %cst_26 = arith.constant dense<0xFF800000> : vector<8xf32>
    %92 = vector.multi_reduction <maximumf>, %91, %cst_26 [1] : vector<8x8xf32> to vector<8xf32>
    %93 = vector.shape_cast %92 : vector<8xf32> to vector<8x1xf32>
    %94 = vector.broadcast %93 : vector<8x1xf32> to vector<8x8xf32>
    %95 = arith.subf %91, %94 : vector<8x8xf32>
    %96 = math.exp %95 : vector<8x8xf32>
    %cst_27 = arith.constant dense<0.000000e+00> : vector<8xf32>
    %97 = vector.multi_reduction <add>, %96, %cst_27 [1] : vector<8x8xf32> to vector<8xf32>
    %98 = vector.shape_cast %97 : vector<8xf32> to vector<8x1xf32>
    %99 = vector.broadcast %98 : vector<8x1xf32> to vector<8x8xf32>
    %100 = arith.divf %96, %99 : vector<8x8xf32>
    %101 = vector.extract_strided_slice %74 {offsets = [0, 32], sizes = [8, 32], strides = [1, 1]} : vector<8x128xf32> to vector<8x32xf32>
    %cst_28 = arith.constant dense<0.000000e+00> : vector<8x32xf32>
    %102 = tpu.matmul %100, %101, %cst_28 {dimension_numbers = #tpu.dot_dimension_numbers<[1], [0], [0], [1], [0, 0, 1, 1], [], []>} : vector<8x8xf32>, vector<8x32xf32>, vector<8x32xf32> -> vector<8x32xf32>
    %103 = arith.addf %88, %102 : vector<8x32xf32>
    %104 = vector.extract_strided_slice %12 {offsets = [8, 16], sizes = [8, 8], strides = [1, 1]} : vector<16x32xf32> to vector<8x8xf32>
    %105 = vector.extract_strided_slice %13 {offsets = [8, 16], sizes = [8, 8], strides = [1, 1]} : vector<16x32xf32> to vector<8x8xf32>
    %cst_29 = arith.constant dense<0.000000e+00> : vector<8x8xf32>
    %106 = tpu.matmul %104, %105, %cst_29 {dimension_numbers = #tpu.dot_dimension_numbers<[1], [1], [0], [0], [0, 0, 1, 0], [], []>} : vector<8x8xf32>, vector<8x8xf32>, vector<8x8xf32> -> vector<8x8xf32>
    %cst_30 = arith.constant dense<0xFF800000> : vector<8xf32>
    %107 = vector.multi_reduction <maximumf>, %106, %cst_30 [1] : vector<8x8xf32> to vector<8xf32>
    %108 = vector.shape_cast %107 : vector<8xf32> to vector<8x1xf32>
    %109 = vector.broadcast %108 : vector<8x1xf32> to vector<8x8xf32>
    %110 = arith.subf %106, %109 : vector<8x8xf32>
    %111 = math.exp %110 : vector<8x8xf32>
    %cst_31 = arith.constant dense<0.000000e+00> : vector<8xf32>
    %112 = vector.multi_reduction <add>, %111, %cst_31 [1] : vector<8x8xf32> to vector<8xf32>
    %113 = vector.shape_cast %112 : vector<8xf32> to vector<8x1xf32>
    %114 = vector.broadcast %113 : vector<8x1xf32> to vector<8x8xf32>
    %115 = arith.divf %111, %114 : vector<8x8xf32>
    %116 = vector.extract_strided_slice %74 {offsets = [0, 64], sizes = [8, 32], strides = [1, 1]} : vector<8x128xf32> to vector<8x32xf32>
    %cst_32 = arith.constant dense<0.000000e+00> : vector<8x32xf32>
    %117 = tpu.matmul %115, %116, %cst_32 {dimension_numbers = #tpu.dot_dimension_numbers<[1], [0], [0], [1], [0, 0, 1, 1], [], []>} : vector<8x8xf32>, vector<8x32xf32>, vector<8x32xf32> -> vector<8x32xf32>
    %118 = arith.addf %103, %117 : vector<8x32xf32>
    %119 = vector.extract_strided_slice %12 {offsets = [8, 24], sizes = [8, 8], strides = [1, 1]} : vector<16x32xf32> to vector<8x8xf32>
    %120 = vector.extract_strided_slice %13 {offsets = [8, 24], sizes = [8, 8], strides = [1, 1]} : vector<16x32xf32> to vector<8x8xf32>
    %cst_33 = arith.constant dense<0.000000e+00> : vector<8x8xf32>
    %121 = tpu.matmul %119, %120, %cst_33 {dimension_numbers = #tpu.dot_dimension_numbers<[1], [1], [0], [0], [0, 0, 1, 0], [], []>} : vector<8x8xf32>, vector<8x8xf32>, vector<8x8xf32> -> vector<8x8xf32>
    %cst_34 = arith.constant dense<0xFF800000> : vector<8xf32>
    %122 = vector.multi_reduction <maximumf>, %121, %cst_34 [1] : vector<8x8xf32> to vector<8xf32>
    %123 = vector.shape_cast %122 : vector<8xf32> to vector<8x1xf32>
    %124 = vector.broadcast %123 : vector<8x1xf32> to vector<8x8xf32>
    %125 = arith.subf %121, %124 : vector<8x8xf32>
    %126 = math.exp %125 : vector<8x8xf32>
    %cst_35 = arith.constant dense<0.000000e+00> : vector<8xf32>
    %127 = vector.multi_reduction <add>, %126, %cst_35 [1] : vector<8x8xf32> to vector<8xf32>
    %128 = vector.shape_cast %127 : vector<8xf32> to vector<8x1xf32>
    %129 = vector.broadcast %128 : vector<8x1xf32> to vector<8x8xf32>
    %130 = arith.divf %126, %129 : vector<8x8xf32>
    %131 = vector.extract_strided_slice %74 {offsets = [0, 96], sizes = [8, 32], strides = [1, 1]} : vector<8x128xf32> to vector<8x32xf32>
    %cst_36 = arith.constant dense<0.000000e+00> : vector<8x32xf32>
    %132 = tpu.matmul %130, %131, %cst_36 {dimension_numbers = #tpu.dot_dimension_numbers<[1], [0], [0], [1], [0, 0, 1, 1], [], []>} : vector<8x8xf32>, vector<8x32xf32>, vector<8x32xf32> -> vector<8x32xf32>
    %133 = arith.addf %118, %132 : vector<8x32xf32>
    %134 = tpu.concatenate %73, %133 in 0 : vector<8x32xf32>, vector<8x32xf32> -> vector<16x32xf32>
    %135 = vector.broadcast %3 : vector<1x32xf32> to vector<16x32xf32>
    %136 = arith.addf %134, %135 : vector<16x32xf32>
    %137 = arith.addf %0, %136 : vector<16x32xf32>
    %cst_37 = arith.constant dense<0.000000e+00> : vector<16xf32>
    %138 = vector.multi_reduction <add>, %137, %cst_37 [1] : vector<16x32xf32> to vector<16xf32>
    %139 = vector.shape_cast %138 : vector<16xf32> to vector<16x1xf32>
    %cst_38 = arith.constant 3.200000e+01 : f32
    %140 = vector.broadcast %cst_38 : f32 to vector<16x1xf32>
    %141 = arith.divf %139, %140 : vector<16x1xf32>
    %142 = vector.broadcast %141 : vector<16x1xf32> to vector<16x32xf32>
    %143 = arith.subf %137, %142 : vector<16x32xf32>
    %144 = arith.mulf %143, %143 : vector<16x32xf32>
    %cst_39 = arith.constant dense<0.000000e+00> : vector<16xf32>
    %145 = vector.multi_reduction <add>, %144, %cst_39 [1] : vector<16x32xf32> to vector<16xf32>
    %146 = vector.shape_cast %145 : vector<16xf32> to vector<16x1xf32>
    %cst_40 = arith.constant 3.200000e+01 : f32
    %147 = vector.broadcast %cst_40 : f32 to vector<16x1xf32>
    %148 = arith.divf %146, %147 : vector<16x1xf32>
    %149 = vector.broadcast %141 : vector<16x1xf32> to vector<16x32xf32>
    %150 = arith.subf %137, %149 : vector<16x32xf32>
    %cst_41 = arith.constant 9.99999997E-7 : f32
    %151 = vector.broadcast %cst_41 : f32 to vector<16x1xf32>
    %152 = arith.addf %148, %151 : vector<16x1xf32>
    %153 = math.rsqrt %152 : vector<16x1xf32>
    %154 = vector.broadcast %153 : vector<16x1xf32> to vector<16x32xf32>
    %155 = arith.mulf %150, %154 : vector<16x32xf32>
    %156 = vector.broadcast %5 : vector<1x32xf32> to vector<16x32xf32>
    %157 = arith.mulf %155, %156 : vector<16x32xf32>
    %158 = vector.broadcast %6 : vector<1x32xf32> to vector<16x32xf32>
    %159 = arith.addf %157, %158 : vector<16x32xf32>
    %160 = vector.extract_strided_slice %1 {offsets = [0, 192], sizes = [32, 64], strides = [1, 1]} : vector<32x256xf32> to vector<32x64xf32>
    %cst_42 = arith.constant dense<0.000000e+00> : vector<16x64xf32>
    %161 = tpu.matmul %159, %160, %cst_42 {dimension_numbers = #tpu.dot_dimension_numbers<[1], [0], [0], [1], [0, 0, 1, 1], [], []>} : vector<16x32xf32>, vector<32x64xf32>, vector<16x64xf32> -> vector<16x64xf32>
    %162 = vector.broadcast %9 : vector<1x64xf32> to vector<16x64xf32>
    %163 = arith.addf %161, %162 : vector<16x64xf32>
    %c0_43 = arith.constant 0 : index
    %c0_44 = arith.constant 0 : index
    %164 = vector.load %arg2[%c0_43, %c0_44] : memref<64x32xf32, #tpu.memory_space<vmem>>, vector<64x32xf32>
    %cst_45 = arith.constant dense<0.000000e+00> : vector<16x32xf32>
    %165 = tpu.matmul %163, %164, %cst_45 {dimension_numbers = #tpu.dot_dimension_numbers<[1], [0], [0], [1], [0, 0, 1, 1], [], []>} : vector<16x64xf32>, vector<64x32xf32>, vector<16x32xf32> -> vector<16x32xf32>
    %166 = vector.broadcast %4 : vector<1x32xf32> to vector<16x32xf32>
    %167 = arith.addf %165, %166 : vector<16x32xf32>
    %cst_46 = arith.constant 0.000000e+00 : f32
    %168 = vector.broadcast %cst_46 : f32 to vector<16x32xf32>
    %169 = arith.maximumf %167, %168 : vector<16x32xf32>
    %170 = arith.addf %159, %169 : vector<16x32xf32>
    %cst_47 = arith.constant dense<0.000000e+00> : vector<16xf32>
    %171 = vector.multi_reduction <add>, %170, %cst_47 [1] : vector<16x32xf32> to vector<16xf32>
    %172 = vector.shape_cast %171 : vector<16xf32> to vector<16x1xf32>
    %cst_48 = arith.constant 3.200000e+01 : f32
    %173 = vector.broadcast %cst_48 : f32 to vector<16x1xf32>
    %174 = arith.divf %172, %173 : vector<16x1xf32>
    %175 = vector.broadcast %174 : vector<16x1xf32> to vector<16x32xf32>
    %176 = arith.subf %170, %175 : vector<16x32xf32>
    %177 = arith.mulf %176, %176 : vector<16x32xf32>
    %cst_49 = arith.constant dense<0.000000e+00> : vector<16xf32>
    %178 = vector.multi_reduction <add>, %177, %cst_49 [1] : vector<16x32xf32> to vector<16xf32>
    %179 = vector.shape_cast %178 : vector<16xf32> to vector<16x1xf32>
    %cst_50 = arith.constant 3.200000e+01 : f32
    %180 = vector.broadcast %cst_50 : f32 to vector<16x1xf32>
    %181 = arith.divf %179, %180 : vector<16x1xf32>
    %182 = vector.broadcast %174 : vector<16x1xf32> to vector<16x32xf32>
    %183 = arith.subf %170, %182 : vector<16x32xf32>
    %cst_51 = arith.constant 9.99999997E-7 : f32
    %184 = vector.broadcast %cst_51 : f32 to vector<16x1xf32>
    %185 = arith.addf %181, %184 : vector<16x1xf32>
    %186 = math.rsqrt %185 : vector<16x1xf32>
    %187 = vector.broadcast %186 : vector<16x1xf32> to vector<16x32xf32>
    %188 = arith.mulf %183, %187 : vector<16x32xf32>
    %189 = vector.broadcast %7 : vector<1x32xf32> to vector<16x32xf32>
    %190 = arith.mulf %188, %189 : vector<16x32xf32>
    %191 = vector.broadcast %8 : vector<1x32xf32> to vector<16x32xf32>
    %192 = arith.addf %190, %191 : vector<16x32xf32>
    %c0_52 = arith.constant 0 : index
    %c0_53 = arith.constant 0 : index
    %193 = vector.load %arg4[%c0_52, %c0_53] : memref<16x32xf32, #tpu.memory_space<vmem>>, vector<16x32xf32>
    tpu.vector_store %arg4[%c0_52, %c0_53], %192 {strides = array<i32>} : memref<16x32xf32, #tpu.memory_space<vmem>>, vector<16x32xf32>,
    return
  }
}

</mosaic_0001>

<bundles_post_ra>
// kernel: tpu_custom_call.1
= control target key start
LH: loop header
LB: loop body
LE: loop exit
PB: predicated region body
PF: predicated region fallthrough
CT: control target
= control target key end

     0   :  { %v2046_v8 = vmov 0.0   ;;  %s2360_s0 = inlined_call_operand.vmem [shape: f32[16,32], index: 0, kind: input, shape index: {}]   ;;  %s2361_s1 = inlined_call_operand.vmem [shape: f32[32,256], index: 1, kind: input, shape index: {}]   ;;  %s2362_s2 = inlined_call_operand.vmem [shape: f32[64,32], index: 2, kind: input, shape index: {}]   ;;  %s2363_s3 = inlined_call_operand.vmem [shape: f32[8,64], index: 3, kind: input, shape index: {}]   ;;  %s2364_s4 = inlined_call_operand.hbm [shape: f32[16,32], index: 4, kind: output, shape index: {}]  }
   0x1   :  { %v2088_v0 = vld [vmem:[%s2361_s1 + $0x8] sm:$0xff]  ;;  %v2093_v1 = vld [vmem:[%s2361_s1 + $0x18] sm:$0xff]  ;;  %v20_v2 = vld [vmem:[%s2361_s1] sm:$0xff]  ;;  %100 = vmatprep.mubr.f32.mxu0 %v2046_v8  ;;  %106 = vmatprep.mubr.f32.mxu1 %v2046_v8 }
   0x2   :  { %v1972_v3 = vpack.i.bf16 %v2093_v1, %v2088_v0  ;;  %v1922_v4 = vpack.c.bf16 %v2093_v1, %v2088_v0  ;;  %v22_v5 = vld [vmem:[%s2361_s1 + $0x10] sm:$0xff]  ;;  %v2108_v6 = vld [vmem:[%s2361_s1 + $0x28] sm:$0xff]  ;;  %v2113_v7 = vld [vmem:[%s2361_s1 + $0x38] sm:$0xff] }
   0x3   :  { %v1924_v9 = vpack.c.bf16 %v22_v5, %v20_v2  ;;  %v1926_v10 = vpack.c.bf16 %v2113_v7, %v2108_v6  ;;  %v24_v11 = vld [vmem:[%s2361_s1 + $0x20] sm:$0xff]  ;;  %v26_v12 = vld [vmem:[%s2361_s1 + $0x30] sm:$0xff] }
   0x4   :  { %1923 = vmatprep.subr.bf16.mxu0 %v1922_v4  ;;  %1954 = vmatprep.subr.bf16.mxu1 %v1922_v4 }
   0x5   :  { %9 = vsyncpa [#allocation3], 0  ;;  %1925 = vmatpush1.bf16.msra.mxu0 %v1924_v9  ;;  %v1928_v13 = vpack.c.bf16 %v26_v12, %v24_v11  ;;  %1956 = vmatpush1.bf16.msra.mxu1 %v1924_v9  ;;  %v2128_v14 = vld [vmem:[%s2360_s0] sm:$0xff]  ;;  %vm29_vm0 = vcmask 261120   ;;  %v2137_v15 = vld [vmem:[%s2360_s0 + $0x8] sm:$0xff]  ;;  %vm2047_vm1 = vmmov 0  }
   0x6   :  { %1927 = vmatprep.subr.bf16.mxu0 %v1926_v10  ;;  %1955 = vmatprep.subr.bf16.mxu1 %v1926_v10  ;;  %s2048_s8 = smov 120   ;;  %s2049_s0 = smov 96   ;;  %vm116_vm2 = vcmask 64512   ;;  %vm1592_vm3 = vcmask 523264  }
   0x7   :  { %s2050_s9 = smov 88   ;;  %s2051_s10 = smov 80  }
   0x8   :  { %s2052_s11 = smov 112   ;;  %s2053_s12 = smov 104  }
   0x9   :  { %1929 = vmatpush1.bf16.msra.mxu0 %v1928_v13  ;;  %1957 = vmatpush1.bf16.msra.mxu1 %v1928_v13  ;;  %s2054_s13 = smov 72   ;;  %s2055_s14 = smov 64  }
   0xa   :  { %1827 = vmatprep.subr.mxu0 %v2046_v8  ;;  %1812 = vmatprep.subr.mxu1 %v2046_v8  ;;  %s2056_s15 = smov 32  }
   0xc   :  { %1734 = vmatmul.mubr.msk.f32.vlgmr.msra.gmra.mrb[0].mxu0 %vm29_vm0, %v2128_v14  ;;  %1735 = vmatmul.mubr.msk.f32.vlgmr.msra.gmra.mrb[0].mxu1 %vm29_vm0, %v2137_v15 }
   0xd   :  { %1814 = vmatprep.mubr.msk.f32.mxu1 %vm2047_vm1, %v2046_v8  ;;  %1829 = vmatprep.mubr.msk.f32.mxu0 %vm2047_vm1, %v2046_v8 }
  0xdf   :  { %v2145_v16 = vpop.f32.mrb[0].mxu0  ;;  %v2152_v18 = vpop.f32.mrb[0].mxu1 }
  0xe0   :  { %v104_v17 = vpop.f32.mrb[1].mxu0  ;;  %1828 = vmatpush3.msra.mxu0 %v2145_v16  ;;  %v2154_v19 = vpop.f32.mrb[1].mxu1 }
  0xe1   :  { %202 = vrot.lane.b32.xlu1 %v104_v17, %s2048_s8  ;;  %114 = vrot.lane.b32.xlu0 %v104_v17, %s2049_s0 }
  0xe2   :  { %1837 = vmatprep.subr.mxu0 %v2046_v8 }
  0xe5   :  { %204 = vrot.lane.b32.xlu0 %v104_v17, %s2050_s9 }
 0x153   :  { %v115_v20 = vpop.permute.xlu0 %114  ;;  %v203_v22 = vpop.permute.xlu1 %202 }
 0x154   :  { %1813 = vmatpush3.xpose.msk.msra.mxu1 %vm116_vm2, %v115_v20 }
 0x155   :  { %1817 = vmatprep.subr.mxu1 %v2046_v8 }
 0x157   :  { %1815 = vmatmul.mubr.msk.f32.vlgmr.msra.gmra.mrb[2].mxu1 %vm116_vm2, %v104_v17  ;;  %v205_v21 = vpop.permute.xlu0 %204 }
 0x158   :  { %1818 = vmatpush3.xpose.msk.msra.mxu1 %vm116_vm2, %v205_v21  ;;  %1819 = vmatprep.mubr.msk.f32.mxu1 %vm2047_vm1, %v2046_v8 }
 0x159   :  { %1822 = vmatprep.subr.mxu1 %v2046_v8 }
 0x15b   :  { %1820 = vmatmul.mubr.msk.f32.vlgmr.msra.gmra.mrb[4].mxu1 %vm116_vm2, %v203_v22 }
 0x15c   :  { %1824 = vmatprep.mubr.msk.f32.mxu1 %vm2047_vm1, %v2046_v8 }
 0x22a   :  { %v187_v23 = vpop.f32.mrb[2].mxu1 }
 0x22b   :  { %v1816_v24 = vpop.f32.mrb[3].mxu1  ;;  %v191_v33 = vsel %vm116_vm2, %v187_v23, -inf }
 0x22e   :  { %v276_v25 = vpop.f32.mrb[4].mxu1 }
 0x22f   :  { %v1821_v26 = vpop.f32.mrb[5].mxu1  ;;  %v280_v27 = vsel %vm116_vm2, %v276_v25, -inf }
 0x230   :  { %281 = vmax.xlane.f32.xlu1 %v280_v27 }
 0x241   :  { %443 = vrot.lane.b32.xlu1 %v104_v17, %s2051_s10 }
 0x245   :  { %441 = vrot.lane.b32.xlu1 %v104_v17, %s2052_s11 }
 0x249   :  { %607 = vrot.lane.b32.xlu1 %v104_v17, %s2053_s12 }
 0x2bd   :  { %v282_v28 = vpop.xlane.xlu1 %281 }
 0x2be   :  { %v283_v29 = vsub.f32 %v276_v25, %v282_v28 }
 0x2c0   :  { %v284_v30 = vmul.f32 1.442695, %v283_v29 }
 0x2c1   :  { %v444_v36 = vpop.permute.xlu1 %443 }
 0x2c2   :  { %1982 = vpow2.f32 %v284_v30 }
 0x2c5   :  { %v442_v39 = vpop.permute.xlu1 %441 }
 0x2c9   :  { %v608_v41 = vpop.permute.xlu1 %607 }
 0x2cc   :  { %v1983_v31 = vpop.eup %1982 }
 0x2cd   :  { %v286_v32 = vsel %vm116_vm2, %v1983_v31, 0.0 }
 0x2ce   :  { %287 = vadd.xlane.f32.xlu0 %v286_v32 }
 0x2e4   :  { %292 = vrot.lane.b32.xlu0 %v2145_v16, %s2049_s0 }
 0x2e8   :  { %609 = vrot.lane.b32.xlu0 %v104_v17, %s2054_s13 }
 0x307   :  { %192 = vmax.xlane.f32.xlu0 %v191_v33 }
 0x35b   :  { %v288_v34 = vpop.xlane.xlu0 %287 }
 0x35c   :  { %1984 = vrcp.f32 %v288_v34 }
 0x35f   :  { %v293_v35 = vpop.permute.xlu0 %292 }
 0x360   :  { %1823 = vmatpush3.msra.mxu1 %v293_v35 }
 0x361   :  { %1832 = vmatprep.subr.mxu1 %v2046_v8 }
 0x363   :  { %v610_v40 = vpop.permute.xlu0 %609 }
 0x366   :  { %v1985_v37 = vpop.eup %1984 }
 0x367   :  { %v290_v38 = vmul.f32 %v1985_v37, %v1983_v31 }
 0x369   :  { %1825 = vmatmul.mubr.msk.f32.vlgmr.msra.gmra.mrb[6].mxu1 %vm116_vm2, %v290_v38 }
 0x36a   :  { %1833 = vmatpush3.xpose.msk.msra.mxu1 %vm116_vm2, %v444_v36  ;;  %1834 = vmatprep.mubr.msk.f32.mxu1 %vm2047_vm1, %v2046_v8 }
 0x36b   :  { %1842 = vmatprep.subr.mxu1 %v2046_v8 }
 0x36d   :  { %1835 = vmatmul.mubr.msk.f32.vlgmr.msra.gmra.mrb[8].mxu1 %vm116_vm2, %v442_v39 }
 0x36e   :  { %1843 = vmatpush3.xpose.msk.msra.mxu1 %vm116_vm2, %v610_v40  ;;  %1844 = vmatprep.mubr.msk.f32.mxu1 %vm2047_vm1, %v2046_v8 }
 0x36f   :  { %1852 = vmatprep.subr.mxu1 %v2046_v8 }
 0x371   :  { %1845 = vmatmul.mubr.msk.f32.vlgmr.msra.gmra.mrb[10].mxu1 %vm116_vm2, %v608_v41 }
 0x372   :  { %1854 = vmatprep.mubr.msk.f32.mxu1 %vm2047_vm1, %v2046_v8 }
 0x394   :  { %v193_v42 = vpop.xlane.xlu0 %192 }
 0x395   :  { %v194_v43 = vsub.f32 %v187_v23, %v193_v42 }
 0x397   :  { %v195_v44 = vmul.f32 1.442695, %v194_v43 }
 0x399   :  { %1986 = vpow2.f32 %v195_v44 }
 0x3a3   :  { %v1987_v53 = vpop.eup %1986 }
 0x3a4   :  { %v197_v54 = vsel %vm116_vm2, %v1987_v53, 0.0 }
 0x43c   :  { %v2189_v45 = vpop.f32.mrb[6].mxu1 }
 0x43d   :  { %v1826_v46 = vpop.f32.mrb[7].mxu1 }
 0x440   :  { %v515_v47 = vpop.f32.mrb[8].mxu1 }
 0x441   :  { %v1836_v48 = vpop.f32.mrb[9].mxu1  ;;  %v519_v49 = vsel %vm116_vm2, %v515_v47, -inf }
 0x442   :  { %520 = vmax.xlane.f32.xlu1 %v519_v49 }
 0x444   :  { %v681_v50 = vpop.f32.mrb[10].mxu1 }
 0x445   :  { %v1846_v51 = vpop.f32.mrb[11].mxu1  ;;  %v685_v52 = vsel %vm116_vm2, %v681_v50, -inf }
 0x446   :  { %686 = vmax.xlane.f32.xlu0 %v685_v52 }
 0x44a   :  { %198 = vadd.xlane.f32.xlu0 %v197_v54 }
 0x453   :  { %530 = vrot.lane.b32.xlu1 %v2145_v16, %s2055_s14 }
 0x4cf   :  { %v521_v55 = vpop.xlane.xlu1 %520 }
 0x4d0   :  { %v522_v56 = vsub.f32 %v515_v47, %v521_v55 }
 0x4d2   :  { %v523_v57 = vmul.f32 1.442695, %v522_v56 }
 0x4d3   :  { %v687_v58 = vpop.xlane.xlu0 %686  ;;  %v531_v10 = vpop.permute.xlu1 %530 }
 0x4d4   :  { %1988 = vpow2.f32 %v523_v57  ;;  %v688_v59 = vsub.f32 %v681_v50, %v687_v58 }
 0x4d6   :  { %v689_v60 = vmul.f32 1.442695, %v688_v59 }
 0x4d7   :  { %v199_v61 = vpop.xlane.xlu0 %198 }
 0x4d8   :  { %1990 = vpow2.f32 %v689_v60 }
 0x4d9   :  { %1992 = vrcp.f32 %v199_v61 }
 0x4de   :  { %v1989_v62 = vpop.eup %1988 }
 0x4df   :  { %v525_v63 = vsel %vm116_vm2, %v1989_v62, 0.0 }
 0x4e0   :  { %526 = vadd.xlane.f32.xlu1 %v525_v63 }
 0x4e2   :  { %v1991_v2 = vpop.eup %1990 }
 0x4e3   :  { %v1993_v4 = vpop.eup %1992  ;;  %v691_v5 = vsel %vm116_vm2, %v1991_v2, 0.0 }
 0x4e4   :  { %v201_v9 = vmul.f32 %v1993_v4, %v1987_v53  ;;  %692 = vadd.xlane.f32.xlu0 %v691_v5 }
 0x4e6   :  { %1830 = vmatmul.mubr.msk.f32.vlgmr.msra.gmra.mrb[2].mxu0 %vm116_vm2, %v201_v9 }
 0x4e7   :  { %1838 = vmatpush3.msra.mxu0 %v531_v10  ;;  %1839 = vmatprep.mubr.msk.f32.mxu0 %vm2047_vm1, %v2046_v8 }
 0x4e8   :  { %1847 = vmatprep.subr.mxu0 %v2046_v8 }
 0x4f1   :  { %863 = vrot.lane.b32.xlu1 %v2154_v19, %s2050_s9 }
 0x4f5   :  { %861 = vrot.lane.b32.xlu1 %v2154_v19, %s2048_s8 }
 0x4f9   :  { %951 = vrot.lane.b32.xlu1 %v2152_v18, %s2049_s0 }
 0x4fa   :  { %696 = vrot.lane.b32.xlu0 %v2145_v16, %s2056_s15 }
 0x4fd   :  { %1100 = vrot.lane.b32.xlu1 %v2154_v19, %s2052_s11 }
 0x56d   :  { %v527_v11 = vpop.xlane.xlu1 %526 }
 0x56e   :  { %1994 = vrcp.f32 %v527_v11 }
 0x571   :  { %v693_v12 = vpop.xlane.xlu0 %692  ;;  %v864_v16 = vpop.permute.xlu1 %863 }
 0x572   :  { %1996 = vrcp.f32 %v693_v12 }
 0x575   :  { %v697_v20 = vpop.permute.xlu0 %696  ;;  %v862_v23 = vpop.permute.xlu1 %861 }
 0x578   :  { %v1995_v13 = vpop.eup %1994 }
 0x579   :  { %v529_v17 = vmul.f32 %v1995_v13, %v1989_v62  ;;  %v952_v40 = vpop.permute.xlu1 %951 }
 0x57b   :  { %1840 = vmatmul.mubr.msk.f32.vlgmr.msra.gmra.mrb[4].mxu0 %vm116_vm2, %v529_v17 }
 0x57c   :  { %v1997_v21 = vpop.eup %1996  ;;  %1848 = vmatpush3.msra.mxu0 %v697_v20  ;;  %1849 = vmatprep.mubr.msk.f32.mxu0 %vm2047_vm1, %v2046_v8 }
 0x57d   :  { %v695_v22 = vmul.f32 %v1997_v21, %v1991_v2  ;;  %1857 = vmatprep.subr.mxu0 %v2046_v8  ;;  %v1101_v43 = vpop.permute.xlu1 %1100 }
 0x57f   :  { %1850 = vmatmul.mubr.msk.f32.vlgmr.msra.gmra.mrb[6].mxu0 %vm116_vm2, %v695_v22 }
 0x580   :  { %1859 = vmatprep.mubr.msk.f32.mxu0 %vm2047_vm1, %v2046_v8 }
 0x583   :  { %1858 = vmatpush3.xpose.msk.msra.mxu0 %vm116_vm2, %v864_v16 }
 0x584   :  { %1867 = vmatprep.subr.mxu0 %v2046_v8 }
 0x586   :  { %1860 = vmatmul.mubr.msk.f32.vlgmr.msra.gmra.mrb[8].mxu0 %vm116_vm2, %v862_v23 }
 0x587   :  { %1868 = vmatpush3.msra.mxu0 %v2152_v18  ;;  %1869 = vmatprep.mubr.msk.f32.mxu0 %vm2047_vm1, %v2046_v8 }
 0x588   :  { %1877 = vmatprep.subr.mxu0 %v2046_v8 }
 0x5b9   :  { %v437_v24 = vpop.f32.mrb[2].mxu0 }
 0x5ba   :  { %v438_v25 = vadd.f32 %v437_v24, %v2189_v45  ;;  %v1831_v26 = vpop.f32.mrb[3].mxu0  ;;  %v1432_v24 = vlaneseq }
 0x64e   :  { %v602_v27 = vpop.f32.mrb[4].mxu0 }
 0x64f   :  { %v606_v28 = vadd.f32 %v602_v27, %v438_v25  ;;  %v1841_v29 = vpop.f32.mrb[5].mxu0  ;;  %v2271_v25 = vshrl.u32 %v1432_v24, 7  ;;  %v2277_v27 = vld [vmem:[%s2363_s3] sm:$0xff] }
 0x651   :  { %v1434_v26 = vsub.s32 0, %v2271_v25 }
 0x652   :  { %v768_v30 = vpop.f32.mrb[6].mxu0 }
 0x653   :  { %v2227_v31 = vadd.f32 %v768_v30, %v606_v28  ;;  %v1851_v32 = vpop.f32.mrb[7].mxu0  ;;  %v1435_v28 = vrot.slane %v2277_v27, %v1434_v26 }
 0x655   :  { %v1436_v29 = vadd.f32 %v1435_v28, %v2227_v31 }
 0x657   :  { %v1438_v30 = vadd.f32 %v1436_v29, %v2128_v14 }
 0x659   :  { %v935_v33 = vpop.f32.mrb[8].mxu0  ;;  %v1440_v32 = vsel %vm29_vm0, %v1438_v30, 0.0 }
 0x65a   :  { %v1861_v34 = vpop.f32.mrb[9].mxu0  ;;  %v939_v35 = vsel %vm116_vm2, %v935_v33, -inf }
 0x65b   :  { %940 = vmax.xlane.f32.xlu0 %v939_v35 }
 0x671   :  { %774 = vrot.lane.b32.xlu0 %v2154_v19, %s2049_s0 }
 0x675   :  { %1102 = vrot.lane.b32.xlu0 %v2154_v19, %s2051_s10 }
 0x679   :  { %1268 = vrot.lane.b32.xlu0 %v2154_v19, %s2054_s13 }
 0x6e8   :  { %v941_v36 = vpop.xlane.xlu0 %940 }
 0x6e9   :  { %v942_v37 = vsub.f32 %v935_v33, %v941_v36 }
 0x6eb   :  { %v943_v38 = vmul.f32 1.442695, %v942_v37 }
 0x6ec   :  { %v775_v39 = vpop.permute.xlu0 %774 }
 0x6ed   :  { %1998 = vpow2.f32 %v943_v38  ;;  %1853 = vmatpush3.xpose.msk.msra.mxu1 %vm116_vm2, %v775_v39 }
 0x6ee   :  { %1862 = vmatprep.subr.mxu1 %v2046_v8 }
 0x6f0   :  { %1855 = vmatmul.mubr.msk.f32.vlgmr.msra.gmra.mrb[12].mxu1 %vm116_vm2, %v2154_v19  ;;  %v1103_v46 = vpop.permute.xlu0 %1102 }
 0x6f1   :  { %1863 = vmatpush3.msra.mxu1 %v952_v40  ;;  %1864 = vmatprep.mubr.msk.f32.mxu1 %vm2047_vm1, %v2046_v8 }
 0x6f2   :  { %1872 = vmatprep.subr.mxu1 %v2046_v8 }
 0x6f4   :  { %v1269_v48 = vpop.permute.xlu0 %1268 }
 0x6f7   :  { %v1999_v41 = vpop.eup %1998 }
 0x6f8   :  { %v945_v42 = vsel %vm116_vm2, %v1999_v41, 0.0 }
 0x6f9   :  { %946 = vadd.xlane.f32.xlu1 %v945_v42 }
 0x70a   :  { %1266 = vrot.lane.b32.xlu1 %v2154_v19, %s2053_s12 }
 0x786   :  { %v947_v44 = vpop.xlane.xlu1 %946 }
 0x787   :  { %2000 = vrcp.f32 %v947_v44 }
 0x78a   :  { %v1267_v19 = vpop.permute.xlu1 %1266 }
 0x791   :  { %v2001_v45 = vpop.eup %2000 }
 0x792   :  { %v949_v47 = vmul.f32 %v2001_v45, %v1999_v41 }
 0x794   :  { %1865 = vmatmul.mubr.msk.f32.vlgmr.msra.gmra.mrb[14].mxu1 %vm116_vm2, %v949_v47 }
 0x795   :  { %1873 = vmatpush3.xpose.msk.msra.mxu1 %vm116_vm2, %v1103_v46  ;;  %1874 = vmatprep.mubr.msk.f32.mxu1 %vm2047_vm1, %v2046_v8 }
 0x796   :  { %1882 = vmatprep.subr.mxu1 %v2046_v8 }
 0x798   :  { %1875 = vmatmul.mubr.msk.f32.vlgmr.msra.gmra.mrb[16].mxu1 %vm116_vm2, %v1101_v43 }
 0x799   :  { %1883 = vmatpush3.xpose.msk.msra.mxu1 %vm116_vm2, %v1269_v48  ;;  %1884 = vmatprep.mubr.msk.f32.mxu1 %vm2047_vm1, %v2046_v8  ;;  %v1469_v48 = vsub.s32 2, %v2271_v25 }
 0x79c   :  { %1885 = vmatmul.mubr.msk.f32.vlgmr.msra.gmra.mrb[18].mxu1 %vm116_vm2, %v1267_v19  ;;  %v1475_v19 = vsub.s32 3, %v2271_v25 }
 0x7c3   :  { %v846_v49 = vpop.f32.mrb[12].mxu1 }
 0x7c4   :  { %v1856_v50 = vpop.f32.mrb[13].mxu1  ;;  %v850_v51 = vsel %vm116_vm2, %v846_v49, -inf }
 0x7c5   :  { %851 = vmax.xlane.f32.xlu0 %v850_v51 }
 0x852   :  { %v852_v52 = vpop.xlane.xlu0 %851 }
 0x853   :  { %v853_v53 = vsub.f32 %v846_v49, %v852_v52  ;;  %v1470_v49 = vrot.slane %v2277_v27, %v1469_v48  ;;  %v1476_v52 = vrot.slane %v2277_v27, %v1475_v19 }
 0x855   :  { %v854_v54 = vmul.f32 1.442695, %v853_v53 }
 0x857   :  { %2002 = vpow2.f32 %v854_v54 }
 0x861   :  { %v2003_v63 = vpop.eup %2002 }
 0x862   :  { %v856_v2 = vsel %vm116_vm2, %v2003_v63, 0.0 }
 0x867   :  { %v2257_v55 = vpop.f32.mrb[14].mxu1 }
 0x868   :  { %v1866_v56 = vpop.f32.mrb[15].mxu1 }
 0x86b   :  { %v1174_v57 = vpop.f32.mrb[16].mxu1 }
 0x86c   :  { %v1876_v58 = vpop.f32.mrb[17].mxu1  ;;  %v1178_v59 = vsel %vm116_vm2, %v1174_v57, -inf }
 0x86d   :  { %1179 = vmax.xlane.f32.xlu1 %v1178_v59 }
 0x86f   :  { %v1340_v60 = vpop.f32.mrb[18].mxu1 }
 0x870   :  { %v1886_v61 = vpop.f32.mrb[19].mxu1  ;;  %v1344_v62 = vsel %vm116_vm2, %v1340_v60, -inf }
 0x871   :  { %1345 = vmax.xlane.f32.xlu0 %v1344_v62 }
 0x875   :  { %857 = vadd.xlane.f32.xlu0 %v856_v2 }
 0x8fa   :  { %v1180_v4 = vpop.xlane.xlu1 %1179 }
 0x8fb   :  { %v1181_v5 = vsub.f32 %v1174_v57, %v1180_v4 }
 0x8fd   :  { %v1182_v9 = vmul.f32 1.442695, %v1181_v5  ;;  %v1977_v5 = vpack.i.bf16 %v2113_v7, %v2108_v6  ;;  %v1582_v6 = vld [vmem:[%s2362_s2 + $0x10] sm:$0xff] }
 0x8fe   :  { %v1346_v10 = vpop.xlane.xlu0 %1345 }
 0x8ff   :  { %2004 = vpow2.f32 %v1182_v9  ;;  %v1347_v11 = vsub.f32 %v1340_v60, %v1346_v10 }
 0x901   :  { %v1348_v12 = vmul.f32 1.442695, %v1347_v11 }
 0x902   :  { %v858_v13 = vpop.xlane.xlu0 %857 }
 0x903   :  { %2006 = vpow2.f32 %v1348_v12 }
 0x904   :  { %2008 = vrcp.f32 %v858_v13  ;;  %v1581_v13 = vld [vmem:[%s2362_s2 + $0x8] sm:$0xff] }
 0x909   :  { %v2005_v17 = vpop.eup %2004 }
 0x90a   :  { %v1184_v20 = vsel %vm116_vm2, %v2005_v17, 0.0 }
 0x90b   :  { %1185 = vadd.xlane.f32.xlu1 %v1184_v20 }
 0x90d   :  { %v2007_v21 = vpop.eup %2006 }
 0x90e   :  { %v2009_v22 = vpop.eup %2008  ;;  %v1350_v16 = vsel %vm116_vm2, %v2007_v21, 0.0 }
 0x90f   :  { %v860_v23 = vmul.f32 %v2009_v22, %v2003_v63  ;;  %1351 = vadd.xlane.f32.xlu0 %v1350_v16  ;;  %v1585_v22 = vld [vmem:[%s2362_s2 + $0x28] sm:$0xff] }
 0x911   :  { %1870 = vmatmul.mubr.msk.f32.vlgmr.msra.gmra.mrb[10].mxu0 %vm116_vm2, %v860_v23 }
 0x912   :  { %1879 = vmatprep.mubr.msk.f32.mxu0 %vm2047_vm1, %v2046_v8 }
 0x91c   :  { %1189 = vrot.lane.b32.xlu1 %v2152_v18, %s2055_s14 }
 0x925   :  { %1355 = vrot.lane.b32.xlu0 %v2152_v18, %s2056_s15 }
 0x940   :  { %1441 = vadd.xlane.f32.xlu1 %v1440_v32 }
 0x998   :  { %v1186_v18 = vpop.xlane.xlu1 %1185 }
 0x999   :  { %2010 = vrcp.f32 %v1186_v18 }
 0x99c   :  { %v1190_v33 = vpop.permute.xlu1 %1189  ;;  %v1352_v34 = vpop.xlane.xlu0 %1351 }
 0x99d   :  { %2012 = vrcp.f32 %v1352_v34  ;;  %1878 = vmatpush3.msra.mxu0 %v1190_v33 }
 0x99e   :  { %1887 = vmatprep.subr.mxu0 %v2046_v8 }
 0x9a0   :  { %v1356_v37 = vpop.permute.xlu0 %1355 }
 0x9a3   :  { %v2011_v35 = vpop.eup %2010 }
 0x9a4   :  { %v1188_v36 = vmul.f32 %v2011_v35, %v2005_v17  ;;  %v1583_v17 = vld [vmem:[%s2362_s2 + $0x18] sm:$0xff] }
 0x9a5   :  { %v1942_v20 = vpack.c.bf16 %v1583_v17, %v1582_v6 }
 0x9a6   :  { %1880 = vmatmul.mubr.msk.f32.vlgmr.msra.gmra.mrb[12].mxu0 %vm116_vm2, %v1188_v36  ;;  %v1586_v36 = vld [vmem:[%s2362_s2 + $0x30] sm:$0xff] }
 0x9a7   :  { %v2013_v38 = vpop.eup %2012  ;;  %1888 = vmatpush3.msra.mxu0 %v1356_v37  ;;  %1889 = vmatprep.mubr.msk.f32.mxu0 %vm2047_vm1, %v2046_v8  ;;  %v1587_v37 = vld [vmem:[%s2362_s2 + $0x38] sm:$0xff] }
 0x9a8   :  { %v1354_v14 = vmul.f32 %v2013_v38, %v2007_v21  ;;  %v1584_v21 = vld [vmem:[%s2362_s2 + $0x20] sm:$0xff]  ;;  %v1950_v38 = vpack.c.bf16 %v1587_v37, %v1586_v36 }
 0x9a9   :  { %v1946_v16 = vpack.c.bf16 %v1585_v22, %v1584_v21 }
 0x9aa   :  { %1890 = vmatmul.mubr.msk.f32.vlgmr.msra.gmra.mrb[14].mxu0 %vm116_vm2, %v1354_v14  ;;  %v1481_v14 = vsub.s32 6, %v2271_v25 }
 0x9cd   :  { %v1442_v31 = vpop.xlane.xlu1 %1441 }
 0x9ce   :  { %v1447_v39 = vmul.f32 0.03125, %v1442_v31  ;;  %v1482_v31 = vrot.slane %v2277_v27, %v1481_v14 }
 0x9d0   :  { %v1449_v40 = vsub.f32 %v1438_v30, %v1447_v39 }
 0x9d2   :  { %v1451_v41 = vmul.f32 %v1449_v40, %v1449_v40 }
 0x9d4   :  { %v1453_v42 = vsel %vm29_vm0, %v1451_v41, 0.0 }
 0x9d5   :  { %1454 = vadd.xlane.f32.xlu1 %v1453_v42 }
 0x9e4   :  { %v1096_v43 = vpop.f32.mrb[10].mxu0 }
 0x9e5   :  { %v1097_v44 = vadd.f32 %v1096_v43, %v2257_v55  ;;  %v1871_v45 = vpop.f32.mrb[11].mxu0  ;;  %v1590_v43 = vsub.s32 1, %v2271_v25 }
 0x9e6   :  { %1973 = vrot.lane.b32.xlu1 %v1972_v3, %s2055_s14 }
 0xa62   :  { %v1455_v8 = vpop.xlane.xlu1 %1454 }
 0xa63   :  { %v1459_v46 = vmul.f32 0.03125, %v1455_v8 }
 0xa65   :  { %v1461_v47 = vadd.f32 1e-06, %v1459_v46 }
 0xa66   :  { %v1974_v9 = vpop.permute.xlu1 %1973 }
 0xa67   :  { %2014 = vrsqrt.f32 %v1461_v47  ;;  %v1976_v10 = vunpack.i.h.bf16 %v1974_v9  ;;  %v1975_v11 = vunpack.i.l.bf16 %v1974_v9  ;;  %v1712_v9 = vsub.s32 5, %v2271_v25 }
 0xa69   :  { %v1930_v12 = vpack.c.bf16 %v1976_v10, %v1975_v11 }
 0xa6b   :  { %1931 = vmatprep.subr.bf16.mxu1 %v1930_v12 }
 0xa6c   :  { %1933 = vmatpush3.bf16.msra.mxu1 %v1930_v12 }
 0xa71   :  { %v2015_v50 = vpop.eup %2014 }
 0xa72   :  { %v1465_v51 = vmul.f32 %v2015_v50, %v1449_v40 }
 0xa74   :  { %v1471_v53 = vmul.f32 %v1470_v49, %v1465_v51 }
 0xa76   :  { %v2298_v54 = vadd.f32 %v1476_v52, %v1471_v53 }
 0xa78   :  { %1900 = vmatprep.mubr.msk.f32.mxu1 %vm29_vm0, %v2298_v54 }
 0xa79   :  { %v1261_v0 = vpop.f32.mrb[12].mxu0 }
 0xa7a   :  { %v1265_v1 = vadd.f32 %v1261_v0, %v1097_v44  ;;  %v1881_v3 = vpop.f32.mrb[13].mxu0  ;;  %v1591_v44 = vrot.slane %v2277_v27, %v1590_v43 }
 0xa7d   :  { %v1427_v55 = vpop.f32.mrb[14].mxu0 }
 0xa7e   :  { %v1431_v56 = vadd.f32 %v1427_v55, %v1265_v1  ;;  %v1891_v57 = vpop.f32.mrb[15].mxu0 }
 0xa80   :  { %v1437_v58 = vadd.f32 %v1435_v28, %v1431_v56 }
 0xa82   :  { %v1439_v59 = vadd.f32 %v1437_v58, %v2137_v15  ;;  %v1580_v15 = vld [vmem:[%s2362_s2] sm:$0xff]  ;;  %s2057_s2 = smov [#allocation2]  }
 0xa83   :  { %v1938_v7 = vpack.c.bf16 %v1581_v13, %v1580_v15  ;;  %v1713_v13 = vrot.slane %v2277_v27, %v1712_v9  ;;  %s1723_s1 = sshll.u32 %s2057_s2, 4  ;;  %s1724_s1 = int_to_ptr.vmem [resolvable:$true] %s1723_s1 }
 0xa84   :  { %v1443_v60 = vsel %vm29_vm0, %v1439_v59, 0.0  ;;  %s2022_s7 = scalar_lea.vmem %s1724_s1, 256  ;;  %p2027_p1 = scmp.lt.s32.totalorder %s1724_s1, %s1724_s1 }
 0xa85   :  { %1444 = vadd.xlane.f32.xlu0 %v1443_v60  ;;  %1939 = vmatprep.subr.bf16.mxu0 %v1938_v7  ;;  %p2023_p0 = scmp.ne.s32.totalorder %s1724_s1, %s2022_s7  ;;  %p2028_p2 = scmp.lt.s32.totalorder %s2022_s7, %s2022_s7 }
 0xa86   :  { %1941 = vmatpush3.bf16.msra.mxu0 %v1938_v7 }
 0xa87   :  { %1943 = vmatprep.subr.bf16.mxu0 %v1942_v20  ;;  %p2029_p3 = por %p2028_p2, %p2027_p1 }
 0xa89   :  { %p2030_p4 = pnand %p2029_p3, %p2023_p0 }
 0xa8a   :  { %1945 = vmatpush3.bf16.msra.mxu0 %v1942_v20 }
 0xa8b   :  { %1947 = vmatprep.subr.bf16.mxu0 %v1946_v16 }
 0xa8e   :  { %1949 = vmatpush3.bf16.msra.mxu0 %v1946_v16 }
 0xa8f   :  { %1951 = vmatprep.subr.bf16.mxu0 %v1950_v38 }
 0xa92   :  { %1953 = vmatpush3.bf16.msra.mxu0 %v1950_v38 }
 0xb12   :  { %v1445_v61 = vpop.xlane.xlu0 %1444 }
 0xb13   :  { %v1448_v62 = vmul.f32 0.03125, %v1445_v61 }
 0xb15   :  { %v1450_v63 = vsub.f32 %v1439_v59, %v1448_v62 }
 0xb17   :  { %v1452_v2 = vmul.f32 %v1450_v63, %v1450_v63 }
 0xb19   :  { %v1456_v4 = vsel %vm29_vm0, %v1452_v2, 0.0 }
 0xb1a   :  { %1457 = vadd.xlane.f32.xlu0 %v1456_v4 }
 0xb30   :  { %1978 = vrot.lane.b32.xlu0 %v1977_v5, %s2055_s14  ;;  %v1706_v5 = vsub.s32 4, %v2271_v25 }
 0xb32   :  { %v1707_v10 = vrot.slane %v2277_v27, %v1706_v5 }
 0xba7   :  { %v1458_v23 = vpop.xlane.xlu0 %1457 }
 0xba8   :  { %v1460_v24 = vmul.f32 0.03125, %v1458_v23 }
 0xbaa   :  { %v1462_v26 = vadd.f32 1e-06, %v1460_v24 }
 0xbab   :  { %v1979_v28 = vpop.permute.xlu0 %1978 }
 0xbac   :  { %2016 = vrsqrt.f32 %v1462_v26  ;;  %v1981_v29 = vunpack.i.h.bf16 %v1979_v28  ;;  %v1980_v30 = vunpack.i.l.bf16 %v1979_v28 }
 0xbae   :  { %v1934_v32 = vpack.c.bf16 %v1981_v29, %v1980_v30 }
 0xbb0   :  { %1935 = vmatprep.subr.bf16.mxu1 %v1934_v32 }
 0xbb1   :  { %1937 = vmatpush3.bf16.msra.mxu1 %v1934_v32 }
 0xbb6   :  { %v2017_v18 = vpop.eup %2016 }
 0xbb7   :  { %v1466_v33 = vmul.f32 %v2017_v18, %v1450_v63 }
 0xbb9   :  { %v1472_v34 = vmul.f32 %v1470_v49, %v1466_v33 }
 0xbbb   :  { %v1478_v35 = vadd.f32 %v1476_v52, %v1472_v34 }
 0xbbd   :  { %1901 = vmatmul.mubr.msk.f32.vlgmr.msra.gmra.mrb[20].mxu1 %vm29_vm0, %v1478_v35 }
 0xc90   :  { %v1902_v39 = vpop.f32.mrb[20].mxu1 }
 0xc91   :  { %v1571_v40 = vpop.f32.mrb[21].mxu1  ;;  %v1577_v42 = vadd.f32 %v1902_v39, %v1482_v31 }
 0xc92   :  { %v1572_v41 = vadd.f32 %v1571_v40, %v1482_v31 }
 0xc94   :  { %1919 = vmatprep.mubr.msk.f32.mxu0 %vm1592_vm3, %v1572_v41 }
 0xc95   :  { %1920 = vmatmul.mubr.msk.f32.vlgmr.msra.gmra.mrb[16].mxu0 %vm1592_vm3, %v1577_v42 }
 0xd68   :  { %v1921_v45 = vpop.f32.mrb[16].mxu0 }
 0xd69   :  { %v1671_v8 = vadd.f32 %v1921_v45, %v1591_v44  ;;  %v1665_v46 = vpop.f32.mrb[17].mxu0 }
 0xd6a   :  { %v1666_v47 = vadd.f32 %v1665_v46, %v1591_v44 }
 0xd6b   :  { %v1675_v48 = vmax.f32 %v1671_v8, 0.0 }
 0xd6c   :  { %v1674_v19 = vmax.f32 %v1666_v47, 0.0 }
 0xd6d   :  { %v1677_v49 = vadd.f32 %v1675_v48, %v1478_v35 }
 0xd6e   :  { %v1676_v50 = vadd.f32 %v1674_v19, %v2298_v54 }
 0xd6f   :  { %v1681_v51 = vsel %vm29_vm0, %v1677_v49, 0.0 }
 0xd70   :  { %1682 = vadd.xlane.f32.xlu0 %v1681_v51  ;;  %v1678_v52 = vsel %vm29_vm0, %v1676_v50, 0.0 }
 0xd71   :  { %1679 = vadd.xlane.f32.xlu1 %v1678_v52 }
 0xdfd   :  { %v1683_v53 = vpop.xlane.xlu0 %1682 }
 0xdfe   :  { %v1685_v0 = vmul.f32 0.03125, %v1683_v53  ;;  %v1680_v1 = vpop.xlane.xlu1 %1679 }
 0xdff   :  { %v1684_v3 = vmul.f32 0.03125, %v1680_v1 }
 0xe00   :  { %v1687_v55 = vsub.f32 %v1677_v49, %v1685_v0 }
 0xe01   :  { %v1686_v56 = vsub.f32 %v1676_v50, %v1684_v3 }
 0xe02   :  { %v1689_v57 = vmul.f32 %v1687_v55, %v1687_v55 }
 0xe03   :  { %v1688_v58 = vmul.f32 %v1686_v56, %v1686_v56 }
 0xe04   :  { %v1693_v59 = vsel %vm29_vm0, %v1689_v57, 0.0 }
 0xe05   :  { %1694 = vadd.xlane.f32.xlu0 %v1693_v59  ;;  %v1690_v60 = vsel %vm29_vm0, %v1688_v58, 0.0 }
 0xe06   :  { %1691 = vadd.xlane.f32.xlu1 %v1690_v60 }
 0xe92   :  { %v1695_v54 = vpop.xlane.xlu0 %1694 }
 0xe93   :  { %v1697_v61 = vmul.f32 0.03125, %v1695_v54  ;;  %v1692_v62 = vpop.xlane.xlu1 %1691 }
 0xe94   :  { %v1696_v63 = vmul.f32 0.03125, %v1692_v62 }
 0xe95   :  { %v1699_v2 = vadd.f32 1e-06, %v1697_v61 }
 0xe96   :  { %v1698_v4 = vadd.f32 1e-06, %v1696_v63 }
 0xe97   :  { %2018 = vrsqrt.f32 %v1699_v2 }
 0xe98   :  { %2020 = vrsqrt.f32 %v1698_v4 }
 0xea1   :  { %v2019_v11 = vpop.eup %2018 }
 0xea2   :  { %v2021_v12 = vpop.eup %2020  ;;  %v1703_v15 = vmul.f32 %v2019_v11, %v1687_v55 }
 0xea3   :  { %v1702_v6 = vmul.f32 %v2021_v12, %v1686_v56 }
 0xea4   :  { %v1709_v7 = vmul.f32 %v1707_v10, %v1703_v15 }
 0xea5   :  { %v1708_v17 = vmul.f32 %v1707_v10, %v1702_v6 }
 0xea6   :  { %v1715_v20 = vadd.f32 %v1713_v13, %v1709_v7 }
 0xea7   :  { %v1714_v21 = vadd.f32 %v1713_v13, %v1708_v17 }
 0xea8   :  { %1717 = vst.msk [vmem:[#allocation2 + $0x8] sm:$0xff] %vm29_vm0, %v1715_v20 }
 0xea9   :  { %1716 = vst.msk [vmem:[#allocation2] sm:$0xff] %vm29_vm0, %v1714_v21 }
 0xeaa   :  { %2033 = shalt.err (!%p2030_p4)
}
 0xeab   :  { %s2034_s9 = scalar_lea.hbm %s2364_s4, 256 }
 0xeac   :  { %p2035_p5 = scmp.ne.s32.totalorder %s2364_s4, %s2034_s9  ;;  %p2038_p6 = scmp.lt.u32.totalorder %s2034_s9, %s2364_s4 }
 0xeae   :  { %p2040_p7 = pnand %p2038_p6, %p2035_p5 }
 0xeb0   :  { %2043 = shalt.err (!%p2040_p7)
}
 0xeb1   :  { %s2058_s14 = smov 128   ;;  %s2059_s15 = smov 8  }
 0xeb2   :  { %1729 = dma.vmem_to_hbm [thread:$0]  %s1724_s1, 256, %s2364_s4, [#allocation3], %s2058_s14, %s2058_s14, %s2059_s15  }
 0xeb3   :  { %2044 = dma.done.wait [#allocation3], 256  }
 0xeb4   :  { %2045 = vsyncadd [#allocation3], 4294967040 }
 0xeb5   :  { %1733 = vsyncpa [#allocation3], 1 }

</bundles_post_ra>
